<compile_context>
chip_gen: v7x
topology: tpu7x:2x2x1
jax: 0.10.0
libtpu: 0.0.40
codegen_flags: <defaults>
</compile_context>

<pallas_src>
import functools

import jax
import jax.numpy as jnp
from jax.experimental import pallas as pl
from jax.experimental.pallas import tpu as pltpu


def _round_up(x, m):
    return ((x + m - 1) // m) * m


def _choose_tm(m):
    """Batch tile: whole (16-aligned) batch if small, else 256-row tiles."""
    m_pad = _round_up(max(m, 1), 16)     # 16: safe for bf16/f32 sublane tiling
    if m_pad <= 256:
        return m_pad, m_pad
    return 256, _round_up(m_pad, 256)


def _vmem_limit_bytes():
    """Scoped-VMEM limit: ~3/4 of physical (48 MiB on v7x, 96 MiB v5e/v6e)."""
    cap = None
    try:
        cap = getattr(pltpu.get_tpu_info(), "vmem_capacity_bytes", None)
    except Exception:
        cap = None
    if not cap:
        cap = 64 * 1024 * 1024           # conservative default == v7x per-TC VMEM
    cap = min(int(cap), 128 * 1024 * 1024)
    return (3 * cap) // 4


def _vmem_budget_bytes():
    # Leave headroom for compiler-internal scratch / spills.
    return _vmem_limit_bytes() - 4 * 1024 * 1024


# ----------------------------------------------------------------------------
# Params: init (PyTorch-style) + one-time padding / bf16 cast.
# ----------------------------------------------------------------------------
def init_fully_connected_params(key, input_size, output_size,
                                num_hidden_layers, nodes_per_layer):
    """PyTorch Linear init: U(-1/sqrt(fan_in), 1/sqrt(fan_in)).  Weights stored
    as (in_features, out_features)."""
    dims = [input_size] + [nodes_per_layer] * num_hidden_layers + [output_size]
    params = []
    for i in range(len(dims) - 1):
        fan_in, fan_out = dims[i], dims[i + 1]
        key, kw, kb = jax.random.split(key, 3)
        bound = 1.0 / (fan_in ** 0.5)
        w = jax.random.uniform(kw, (fan_in, fan_out), jnp.float32, -bound, bound)
        b = jax.random.uniform(kb, (fan_out,), jnp.float32, -bound, bound)
        params.append((w, b))
    return params


def prepare_params(params):
    """One-time preprocessing (outside the forward path):
      * pad feature dims to multiples of 128 (lane-dense blocks),
      * cast weights to bf16 (MXU-native on v6e/v7x, halves HBM/VMEM bytes),
        keep biases in f32 (epilogue math stays f32),
      * build stacked uniform-size copies for the weight-streaming fallback.
    """
    dims = [params[0][0].shape[0]] + [w.shape[1] for (w, _) in params]
    dims_pad = [_round_up(d, 128) for d in dims]
    d_max = max(dims_pad)

    layers, w_stack, b_stack = [], [], []
    for i, (w, b) in enumerate(params):
        k, n = w.shape
        kp, np_ = dims_pad[i], dims_pad[i + 1]
        layers.append((
            jnp.pad(w, ((0, kp - k), (0, np_ - n))).astype(jnp.bfloat16),
            jnp.pad(b, (0, np_ - n)).reshape(1, np_),          # f32
        ))
        w_stack.append(
            jnp.pad(w, ((0, d_max - k), (0, d_max - n))).astype(jnp.bfloat16))
        b_stack.append(jnp.pad(b, (0, d_max - n)).reshape(1, d_max))  # f32

    return {
        "dims": dims,
        "dims_pad": dims_pad,
        "d_max": d_max,
        "layers": layers,                      # per-layer padded (fused / tiled)
        "w_stack": jnp.stack(w_stack),         # (L, d_max, d_max) bf16
        "b_stack": jnp.stack(b_stack),         # (L, 1, d_max)    f32
    }


# ----------------------------------------------------------------------------
# Path 1 (preferred): fully fused MLP, all weights VMEM-resident, batch grid.
# ----------------------------------------------------------------------------
def _fused_mlp_kernel(*refs, num_layers):
    # refs = (x_ref, w0, b0, ..., w_{L-1}, b_{L-1}, o_ref)
    x_ref, o_ref = refs[0], refs[-1]
    h = x_ref[...]                                       # f32 (tm, K0_pad)
    for i in range(num_layers):                          # fully unrolled
        w = refs[1 + 2 * i][...]                         # bf16 (Kp, Np)
        b = refs[2 + 2 * i][...]                         # f32  (1, Np)
        h = jnp.dot(h.astype(jnp.bfloat16), w,
                    preferred_element_type=jnp.float32) + b
        if i != num_layers - 1:
            h = jnp.maximum(h, 0.0)                      # ReLU in f32 (VPU)
    o_ref[...] = h.astype(o_ref.dtype)


def fused_mlp_pallas(x, prepared):
    M = x.shape[0]
    dims, dims_pad = prepared["dims"], prepared["dims_pad"]
    L = len(prepared["layers"])
    tm, m_pad = _choose_tm(M)

    x_p = jnp.pad(x, ((0, m_pad - M), (0, dims_pad[0] - dims[0])))
    inputs = [x_p]
    in_specs = [pl.BlockSpec((tm, dims_pad[0]), lambda i: (i, 0))]
    for (w_p, b_p) in prepared["layers"]:
        inputs += [w_p, b_p]
        # Constant index_map -> weight/bias blocks stay VMEM-resident across
        # the batch grid (no HBM re-traffic per batch tile).
        # TODO(synk): pipeline_mode=pl.Buffered(1) on these constant blocks
        # would drop the unused second buffer and free more VMEM.
        in_specs += [
            pl.BlockSpec(w_p.shape, lambda i: (0, 0)),
            pl.BlockSpec(b_p.shape, lambda i: (0, 0)),
        ]

    n_out_pad = dims_pad[-1]
    out = pl.pallas_call(
        functools.partial(_fused_mlp_kernel, num_layers=L),
        out_shape=jax.ShapeDtypeStruct((m_pad, n_out_pad), x.dtype),
        grid_spec=pltpu.PrefetchScalarGridSpec(
            num_scalar_prefetch=0,
            grid=(m_pad // tm,),
            in_specs=in_specs,
            out_specs=pl.BlockSpec((tm, n_out_pad), lambda i: (i, 0)),
        ),
        compiler_params=pltpu.CompilerParams(
            dimension_semantics=("parallel",),
            vmem_limit_bytes=_vmem_limit_bytes()),
    )(*inputs)
    return out[:M, :dims[-1]]


def _fused_vmem_bytes(m, prepared):
    """Footprint: double-buffered blocks + live activation."""
    tm, _ = _choose_tm(m)
    dims_pad = prepared["dims_pad"]
    total = 2 * tm * dims_pad[0] * 4                      # x blocks
    for i in range(len(prepared["layers"])):
        total += 2 * dims_pad[i] * dims_pad[i + 1] * 2    # bf16 weights
        total += 2 * dims_pad[i + 1] * 4                  # biases
    total += 2 * tm * dims_pad[-1] * 4                    # out blocks
    total += 3 * tm * max(dims_pad) * 4                   # live activation/casts
    return total


# ----------------------------------------------------------------------------
# Path 2 (fallback): weight-streaming fused kernel.  Grid = (batch tiles, L);
# the activation stays in a VMEM scratch across the layer axis while each
# layer's weight block is pipelined in from HBM.
# ----------------------------------------------------------------------------
def _streaming_mlp_kernel(x_ref, w_ref, b_ref, o_ref, act_ref, *, n_out_pad):
    l = pl.program_id(1)

    @pl.when(l == 0)
    def _():                                   # new batch tile: load activation
        act_ref[...] = x_ref[...]

    y = jnp.dot(act_ref[...].astype(jnp.bfloat16), w_ref[0],
                preferred_element_type=jnp.float32) + b_ref[0]
    is_last = l == pl.num_programs(1) - 1
    y = jnp.where(is_last, y, jnp.maximum(y, 0.0))   # no ReLU on final layer
    act_ref[...] = y

    @pl.when(is_last)
    def _():
        o_ref[...] = y[:, :n_out_pad].astype(o_ref.dtype)


def streaming_mlp_pallas(x, prepared):
    M = x.shape[0]
    dims, dims_pad = prepared["dims"], prepared["dims_pad"]
    d_max = prepared["d_max"]
    L = len(prepared["layers"])
    n_out_pad = dims_pad[-1]
    tm, m_pad = _choose_tm(M)

    x_p = jnp.pad(x, ((0, m_pad - M), (0, d_max - dims[0])))
    out = pl.pallas_call(
        functools.partial(_streaming_mlp_kernel, n_out_pad=n_out_pad),
        out_shape=jax.ShapeDtypeStruct((m_pad, n_out_pad), x.dtype),
        grid_spec=pltpu.PrefetchScalarGridSpec(
            num_scalar_prefetch=0,
            grid=(m_pad // tm, L),
            in_specs=[
                pl.BlockSpec((tm, d_max), lambda m, l: (m, 0)),
                pl.BlockSpec((1, d_max, d_max), lambda m, l: (l, 0, 0)),
                pl.BlockSpec((1, 1, d_max), lambda m, l: (l, 0, 0)),
            ],
            out_specs=pl.BlockSpec((tm, n_out_pad), lambda m, l: (m, 0)),
            scratch_shapes=[pltpu.VMEM((tm, d_max), jnp.float32)],
        ),
        compiler_params=pltpu.CompilerParams(
            dimension_semantics=("parallel", "arbitrary"),
            vmem_limit_bytes=_vmem_limit_bytes()),
    )(x_p, prepared["w_stack"], prepared["b_stack"])
    return out[:M, :dims[-1]]


def _streaming_vmem_bytes(m, prepared):
    tm, _ = _choose_tm(m)
    d_max = prepared["d_max"]
    n_out_pad = prepared["dims_pad"][-1]
    total = 2 * tm * d_max * 4          # x blocks
    total += 2 * d_max * d_max * 2      # streamed bf16 weight blocks (double-buffered)
    total += 2 * d_max * 4              # bias blocks
    total += 2 * tm * n_out_pad * 4     # out blocks
    total += tm * d_max * 4             # activation scratch
    total += 3 * tm * d_max * 4         # live values / casts
    return total


# ----------------------------------------------------------------------------
# Path 3 (last resort): per-layer (M,N,K)-tiled Linear(+ReLU).
# ----------------------------------------------------------------------------
def _tiled_linear_kernel(x_ref, w_ref, b_ref, o_ref, acc_ref, *, apply_relu):
    k = pl.program_id(2)

    @pl.when(k == 0)
    def _():
        acc_ref[...] = jnp.zeros_like(acc_ref)

    acc_ref[...] += jnp.dot(x_ref[...].astype(jnp.bfloat16), w_ref[...],
                            preferred_element_type=jnp.float32)

    @pl.when(k == pl.num_programs(2) - 1)
    def _():
        y = acc_ref[...] + b_ref[...]
        if apply_relu:
            y = jnp.maximum(y, 0.0)
        o_ref[...] = y.astype(o_ref.dtype)


def _pick_tile(dim_pad, candidates, min_tiles=1):
    divs = [c for c in candidates if dim_pad % c == 0]   # 128 always divides
    for c in divs:
        if dim_pad // c >= min_tiles:
            return c
    return divs[-1]


def _tiled_linear(h, w_p, b_p, *, relu, tm):
    m_pad, k_pad = h.shape
    n_pad = w_p.shape[1]
    m_tiles = m_pad // tm
    # If the M grid collapses to 1 block, keep >= 2 N tiles so the "parallel"
    # N axis can still split across v7x's two TensorCores.
    tn = _pick_tile(n_pad, (1024, 512, 256, 128),
                    min_tiles=2 if m_tiles == 1 else 1)
    tk = _pick_tile(k_pad, (2048, 1024, 512, 256, 128))

    return pl.pallas_call(
        functools.partial(_tiled_linear_kernel, apply_relu=relu),
        out_shape=jax.ShapeDtypeStruct((m_pad, n_pad), h.dtype),
        grid_spec=pltpu.PrefetchScalarGridSpec(
            num_scalar_prefetch=0,
            grid=(m_tiles, n_pad // tn, k_pad // tk),
            in_specs=[
                pl.BlockSpec((tm, tk), lambda i, j, k: (i, k)),
                pl.BlockSpec((tk, tn), lambda i, j, k: (k, j)),
                pl.BlockSpec((1, tn), lambda i, j, k: (0, j)),
            ],
            out_specs=pl.BlockSpec((tm, tn), lambda i, j, k: (i, j)),
            scratch_shapes=[pltpu.VMEM((tm, tn), jnp.float32)],
        ),
        compiler_params=pltpu.CompilerParams(
            dimension_semantics=("parallel", "parallel", "arbitrary"),
            vmem_limit_bytes=_vmem_limit_bytes()),
    )(h, w_p, b_p)


def tiled_mlp_pallas(x, prepared):
    """Per-layer tiled path.  Activations stay padded between layers; weights
    come from the pre-padded bf16 pytree so tiles are divisors of the padded
    dims and nothing is re-padded per call."""
    M = x.shape[0]
    dims, dims_pad = prepared["dims"], prepared["dims_pad"]
    tm, m_pad = _choose_tm(M)
    h = jnp.pad(x, ((0, m_pad - M), (0, dims_pad[0] - dims[0])))
    L = len(prepared["layers"])
    for i, (w_p, b_p) in enumerate(prepared["layers"]):
        h = _tiled_linear(h, w_p, b_p, relu=(i != L - 1), tm=tm)
    return h[:M, :dims[-1]]


# ----------------------------------------------------------------------------
# Forward dispatch (mirrors FullyConnectedModel.forward).
# ----------------------------------------------------------------------------
def fully_connected_forward(x, prepared, *, path=None):
    """Linear+ReLU blocks, final Linear without activation.  Dropout layers are
    identity (eval mode)."""
    # TODO(synk): training-mode dropout would use pltpu.prng_seed /
    # pltpu.prng_random_bits inside the fused kernel; eval mode is identity.
    if path is None:
        budget = _vmem_budget_bytes()
        m = x.shape[0]
        if _fused_vmem_bytes(m, prepared) <= budget:
            path = "fused"       # all weights VMEM-resident, zero HBM re-traffic
        elif _streaming_vmem_bytes(m, prepared) <= budget:
            path = "stream"      # activation VMEM-resident, weights streamed
        else:
            path = "tiled"       # huge single layers: per-layer tiled matmul
    if path == "fused":
        return fused_mlp_pallas(x, prepared)
    if path == "stream":
        return streaming_mlp_pallas(x, prepared)
    return tiled_mlp_pallas(x, prepared)


if __name__ == "__main__":
    # Small shapes consistent with the module's constructor.
    batch = 4
    input_size = 16
    output_size = 4
    num_hidden_layers = 3
    nodes_per_layer = 32

    key = jax.random.PRNGKey(0)
    key, kx = jax.random.split(key)
    x = jax.random.normal(kx, (batch, input_size), jnp.float32)

    params = init_fully_connected_params(
        key, input_size, output_size, num_hidden_layers, nodes_per_layer)
    prepared = prepare_params(params)

    # Reference with the same numerics as the kernels: bf16 MXU inputs,
    # f32 accumulation, bias + ReLU in f32.
    ref = x
    for i, (w, b) in enumerate(params):
        ref = jnp.dot(ref.astype(jnp.bfloat16), w.astype(jnp.bfloat16),
                      preferred_element_type=jnp.float32) + b
        if i != len(params) - 1:
            ref = jnp.maximum(ref, 0.0)

    # Default dispatch (fused single kernel at these sizes).
    out = jax.block_until_ready(fully_connected_forward(x, prepared))
    assert out.shape == (batch, output_size)
    assert jnp.allclose(out, ref, atol=1e-3, rtol=1e-3), \
        f"fused mismatch: {jnp.max(jnp.abs(out - ref))}"

    # Weight-streaming fallback (exercised explicitly for coverage).
    out_s = jax.block_until_ready(
        fully_connected_forward(x, prepared, path="stream"))
    assert out_s.shape == (batch, output_size)
    assert jnp.allclose(out_s, ref, atol=1e-3, rtol=1e-3), \
        f"stream mismatch: {jnp.max(jnp.abs(out_s - ref))}"

    # Per-layer tiled last resort (exercised explicitly for coverage).
    out_t = jax.block_until_ready(
        fully_connected_forward(x, prepared, path="tiled"))
    assert out_t.shape == (batch, output_size)
    assert jnp.allclose(out_t, ref, atol=1e-3, rtol=1e-3), \
        f"tiled mismatch: {jnp.max(jnp.abs(out_t - ref))}"

    print("KERNEL_OK")
</pallas_src>

<mosaic_0001>
module attributes {stable_mosaic.version = 11 : i64} {
  func.func @_fused_mlp_kernel(%arg0: i32, %arg1: memref<16x128xf32, #tpu.memory_space<vmem>>, %arg2: memref<128x128xbf16, #tpu.memory_space<vmem>>, %arg3: memref<1x128xf32, #tpu.memory_space<vmem>>, %arg4: memref<128x128xbf16, #tpu.memory_space<vmem>>, %arg5: memref<1x128xf32, #tpu.memory_space<vmem>>, %arg6: memref<128x128xbf16, #tpu.memory_space<vmem>>, %arg7: memref<1x128xf32, #tpu.memory_space<vmem>>, %arg8: memref<128x128xbf16, #tpu.memory_space<vmem>>, %arg9: memref<1x128xf32, #tpu.memory_space<vmem>>, %arg10: memref<16x128xf32, #tpu.memory_space<vmem>>) attributes {dimension_semantics = [#tpu.dimension_semantics<parallel>], iteration_bounds = array<i64: 1>, scalar_prefetch = 0 : i64, scratch_operands = 0 : i64, tpu.core_type = #tpu.core_type<tc>, window_params = [{transform_indices = @transform_0, window_bounds = array<i64: 16, 128>}, {pipeline_mode = #tpu.pipeline_mode<synchronous>, transform_indices = @transform_1, window_bounds = array<i64: 128, 128>}, {pipeline_mode = #tpu.pipeline_mode<synchronous>, transform_indices = @transform_2, window_bounds = array<i64: 1, 128>}, {pipeline_mode = #tpu.pipeline_mode<synchronous>, transform_indices = @transform_3, window_bounds = array<i64: 128, 128>}, {pipeline_mode = #tpu.pipeline_mode<synchronous>, transform_indices = @transform_4, window_bounds = array<i64: 1, 128>}, {pipeline_mode = #tpu.pipeline_mode<synchronous>, transform_indices = @transform_5, window_bounds = array<i64: 128, 128>}, {pipeline_mode = #tpu.pipeline_mode<synchronous>, transform_indices = @transform_6, window_bounds = array<i64: 1, 128>}, {pipeline_mode = #tpu.pipeline_mode<synchronous>, transform_indices = @transform_7, window_bounds = array<i64: 128, 128>}, {pipeline_mode = #tpu.pipeline_mode<synchronous>, transform_indices = @transform_8, window_bounds = array<i64: 1, 128>}, {transform_indices = @transform_9, window_bounds = array<i64: 16, 128>}]} {
    %c0 = arith.constant 0 : index
    %c0_0 = arith.constant 0 : index
    %0 = vector.load %arg1[%c0, %c0_0] : memref<16x128xf32, #tpu.memory_space<vmem>>, vector<16x128xf32>
    %c0_1 = arith.constant 0 : index
    %c0_2 = arith.constant 0 : index
    %1 = vector.load %arg2[%c0_1, %c0_2] : memref<128x128xbf16, #tpu.memory_space<vmem>>, vector<128x128xbf16>
    %c0_3 = arith.constant 0 : index
    %c0_4 = arith.constant 0 : index
    %2 = vector.load %arg3[%c0_3, %c0_4] : memref<1x128xf32, #tpu.memory_space<vmem>>, vector<1x128xf32>
    %3 = arith.truncf %0 : vector<16x128xf32> to vector<16x128xbf16>
    %cst = arith.constant dense<0.000000e+00> : vector<16x128xf32>
    %4 = tpu.matmul %3, %1, %cst {dimension_numbers = #tpu.dot_dimension_numbers<[1], [0], [0], [1], [0, 0, 1, 1], [], []>} : vector<16x128xbf16>, vector<128x128xbf16>, vector<16x128xf32> -> vector<16x128xf32>
    %5 = vector.broadcast %2 : vector<1x128xf32> to vector<16x128xf32>
    %6 = arith.addf %4, %5 : vector<16x128xf32>
    %cst_5 = arith.constant 0.000000e+00 : f32
    %7 = vector.broadcast %cst_5 : f32 to vector<16x128xf32>
    %8 = arith.maximumf %6, %7 : vector<16x128xf32>
    %c0_6 = arith.constant 0 : index
    %c0_7 = arith.constant 0 : index
    %9 = vector.load %arg4[%c0_6, %c0_7] : memref<128x128xbf16, #tpu.memory_space<vmem>>, vector<128x128xbf16>
    %c0_8 = arith.constant 0 : index
    %c0_9 = arith.constant 0 : index
    %10 = vector.load %arg5[%c0_8, %c0_9] : memref<1x128xf32, #tpu.memory_space<vmem>>, vector<1x128xf32>
    %11 = arith.truncf %8 : vector<16x128xf32> to vector<16x128xbf16>
    %cst_10 = arith.constant dense<0.000000e+00> : vector<16x128xf32>
    %12 = tpu.matmul %11, %9, %cst_10 {dimension_numbers = #tpu.dot_dimension_numbers<[1], [0], [0], [1], [0, 0, 1, 1], [], []>} : vector<16x128xbf16>, vector<128x128xbf16>, vector<16x128xf32> -> vector<16x128xf32>
    %13 = vector.broadcast %10 : vector<1x128xf32> to vector<16x128xf32>
    %14 = arith.addf %12, %13 : vector<16x128xf32>
    %cst_11 = arith.constant 0.000000e+00 : f32
    %15 = vector.broadcast %cst_11 : f32 to vector<16x128xf32>
    %16 = arith.maximumf %14, %15 : vector<16x128xf32>
    %c0_12 = arith.constant 0 : index
    %c0_13 = arith.constant 0 : index
    %17 = vector.load %arg6[%c0_12, %c0_13] : memref<128x128xbf16, #tpu.memory_space<vmem>>, vector<128x128xbf16>
    %c0_14 = arith.constant 0 : index
    %c0_15 = arith.constant 0 : index
    %18 = vector.load %arg7[%c0_14, %c0_15] : memref<1x128xf32, #tpu.memory_space<vmem>>, vector<1x128xf32>
    %19 = arith.truncf %16 : vector<16x128xf32> to vector<16x128xbf16>
    %cst_16 = arith.constant dense<0.000000e+00> : vector<16x128xf32>
    %20 = tpu.matmul %19, %17, %cst_16 {dimension_numbers = #tpu.dot_dimension_numbers<[1], [0], [0], [1], [0, 0, 1, 1], [], []>} : vector<16x128xbf16>, vector<128x128xbf16>, vector<16x128xf32> -> vector<16x128xf32>
    %21 = vector.broadcast %18 : vector<1x128xf32> to vector<16x128xf32>
    %22 = arith.addf %20, %21 : vector<16x128xf32>
    %cst_17 = arith.constant 0.000000e+00 : f32
    %23 = vector.broadcast %cst_17 : f32 to vector<16x128xf32>
    %24 = arith.maximumf %22, %23 : vector<16x128xf32>
    %c0_18 = arith.constant 0 : index
    %c0_19 = arith.constant 0 : index
    %25 = vector.load %arg8[%c0_18, %c0_19] : memref<128x128xbf16, #tpu.memory_space<vmem>>, vector<128x128xbf16>
    %c0_20 = arith.constant 0 : index
    %c0_21 = arith.constant 0 : index
    %26 = vector.load %arg9[%c0_20, %c0_21] : memref<1x128xf32, #tpu.memory_space<vmem>>, vector<1x128xf32>
    %27 = arith.truncf %24 : vector<16x128xf32> to vector<16x128xbf16>
    %cst_22 = arith.constant dense<0.000000e+00> : vector<16x128xf32>
    %28 = tpu.matmul %27, %25, %cst_22 {dimension_numbers = #tpu.dot_dimension_numbers<[1], [0], [0], [1], [0, 0, 1, 1], [], []>} : vector<16x128xbf16>, vector<128x128xbf16>, vector<16x128xf32> -> vector<16x128xf32>
    %29 = vector.broadcast %26 : vector<1x128xf32> to vector<16x128xf32>
    %30 = arith.addf %28, %29 : vector<16x128xf32>
    %c0_23 = arith.constant 0 : index
    %c0_24 = arith.constant 0 : index
    %31 = vector.load %arg10[%c0_23, %c0_24] : memref<16x128xf32, #tpu.memory_space<vmem>>, vector<16x128xf32>
    tpu.vector_store %arg10[%c0_23, %c0_24], %30 {strides = array<i32>} : memref<16x128xf32, #tpu.memory_space<vmem>>, vector<16x128xf32>,
    return
  }
  func.func @transform_0(%arg0: i32) -> (i32, i32) {
    %c0_i32 = arith.constant 0 : i32
    %c0_i32_0 = arith.constant 0 : i32
    return %arg0, %c0_i32 : i32, i32
  }
  func.func @transform_1(%arg0: i32) -> (i32, i32) {
    %c0_i32 = arith.constant 0 : i32
    %c0_i32_0 = arith.constant 0 : i32
    %c0_i32_1 = arith.constant 0 : i32
    return %c0_i32, %c0_i32_0 : i32, i32
  }
  func.func @transform_2(%arg0: i32) -> (i32, i32) {
    %c0_i32 = arith.constant 0 : i32
    %c0_i32_0 = arith.constant 0 : i32
    %c0_i32_1 = arith.constant 0 : i32
    return %c0_i32, %c0_i32_0 : i32, i32
  }
  func.func @transform_3(%arg0: i32) -> (i32, i32) {
    %c0_i32 = arith.constant 0 : i32
    %c0_i32_0 = arith.constant 0 : i32
    %c0_i32_1 = arith.constant 0 : i32
    return %c0_i32, %c0_i32_0 : i32, i32
  }
  func.func @transform_4(%arg0: i32) -> (i32, i32) {
    %c0_i32 = arith.constant 0 : i32
    %c0_i32_0 = arith.constant 0 : i32
    %c0_i32_1 = arith.constant 0 : i32
    return %c0_i32, %c0_i32_0 : i32, i32
  }
  func.func @transform_5(%arg0: i32) -> (i32, i32) {
    %c0_i32 = arith.constant 0 : i32
    %c0_i32_0 = arith.constant 0 : i32
    %c0_i32_1 = arith.constant 0 : i32
    return %c0_i32, %c0_i32_0 : i32, i32
  }
  func.func @transform_6(%arg0: i32) -> (i32, i32) {
    %c0_i32 = arith.constant 0 : i32
    %c0_i32_0 = arith.constant 0 : i32
    %c0_i32_1 = arith.constant 0 : i32
    return %c0_i32, %c0_i32_0 : i32, i32
  }
  func.func @transform_7(%arg0: i32) -> (i32, i32) {
    %c0_i32 = arith.constant 0 : i32
    %c0_i32_0 = arith.constant 0 : i32
    %c0_i32_1 = arith.constant 0 : i32
    return %c0_i32, %c0_i32_0 : i32, i32
  }
  func.func @transform_8(%arg0: i32) -> (i32, i32) {
    %c0_i32 = arith.constant 0 : i32
    %c0_i32_0 = arith.constant 0 : i32
    %c0_i32_1 = arith.constant 0 : i32
    return %c0_i32, %c0_i32_0 : i32, i32
  }
  func.func @transform_9(%arg0: i32) -> (i32, i32) {
    %c0_i32 = arith.constant 0 : i32
    %c0_i32_0 = arith.constant 0 : i32
    return %arg0, %c0_i32 : i32, i32
  }
}

</mosaic_0001>

<bundles_post_ra>
// kernel: tpu_custom_call.1
= control target key start
LH: loop header
LB: loop body
LE: loop exit
PB: predicated region body
PF: predicated region fallthrough
CT: control target
= control target key end

     0   :  { %14 = vsyncpa [#allocation3], 0  ;;  %s1123_s0 = inlined_call_operand.hbm [shape: f32[16,128], index: 0, kind: input, shape index: {}]   ;;  %s1124_s1 = inlined_call_operand.hbm [shape: bf16[128,128], index: 1, kind: input, shape index: {}]   ;;  %s1125_s2 = inlined_call_operand.vmem [shape: f32[1,128], index: 2, kind: input, shape index: {}]   ;;  %s1126_s3 = inlined_call_operand.hbm [shape: bf16[128,128], index: 3, kind: input, shape index: {}]   ;;  %s1127_s4 = inlined_call_operand.vmem [shape: f32[1,128], index: 4, kind: input, shape index: {}]   ;;  %s1128_s5 = inlined_call_operand.hbm [shape: bf16[128,128], index: 5, kind: input, shape index: {}]   ;;  %s1129_s6 = inlined_call_operand.vmem [shape: f32[1,128], index: 6, kind: input, shape index: {}]   ;;  %s1130_s7 = inlined_call_operand.hbm [shape: bf16[128,128], index: 7, kind: input, shape index: {}]   ;;  %s1131_s8 = inlined_call_operand.vmem [shape: f32[1,128], index: 8, kind: input, shape index: {}]   ;;  %s1132_s9 = inlined_call_operand.hbm [shape: f32[16,128], index: 9, kind: output, shape index: {}]  }
   0x1   :  { %15 = vsyncpa [#allocation6], 0 }
   0x2   :  { %16 = vsyncpa [#allocation9], 0 }
   0x3   :  { %17 = vsyncpa [#allocation4], 0  ;;  %s919_s30 = smov [#allocation5]   ;;  %s779_s13 = scalar_lea.hbm %s1124_s1, 1024 }
   0x4   :  { %s35_s10 = sshll.u32 %s919_s30, 4  ;;  %p780_p0 = scmp.ne.s32.totalorder %s1124_s1, %s779_s13  ;;  %s36_s10 = int_to_ptr.vmem [resolvable:$true] %s35_s10 }
   0x5   :  { %p783_p1 = scmp.lt.u32.totalorder %s779_s13, %s1124_s1 }
   0x7   :  { %p785_p2 = pnand %p783_p1, %p780_p0 }
   0x9   :  { %788 = shalt.err (!%p785_p2)
}
   0xa   :  { %s789_s18 = scalar_lea.vmem %s36_s10, 1024  ;;  %p794_p4 = scmp.lt.s32.totalorder %s36_s10, %s36_s10 }
   0xb   :  { %p790_p3 = scmp.ne.s32.totalorder %s36_s10, %s789_s18  ;;  %p795_p5 = scmp.lt.s32.totalorder %s789_s18, %s789_s18 }
   0xd   :  { %p796_p6 = por %p795_p5, %p794_p4 }
   0xf   :  { %p797_p7 = pnand %p796_p6, %p790_p3 }
  0x11   :  { %800 = shalt.err (!%p797_p7)
}
  0x12   :  { %s920_s19 = smov 64   ;;  %s921_s20 = smov 4  }
  0x13   :  { %41 = dma.hbm_to_vmem [thread:$0]  %s1124_s1, 1024, %s36_s10, [#allocation6], %s920_s19, %s920_s19, %s921_s20  }
  0x14   :  { %s922_s23 = smov [#allocation8]   ;;  %s923_s25 = smov [#allocation2]  }
  0x15   :  { %s63_s24 = sshll.u32 %s922_s23, 4  ;;  %s23_s26 = sshll.u32 %s923_s25, 4  ;;  %s64_s24 = int_to_ptr.vmem [resolvable:$true] %s63_s24  ;;  %s24_s26 = int_to_ptr.vmem [resolvable:$true] %s23_s26 }
  0x16   :  { %s801_s29 = scalar_lea.hbm %s1128_s5, 1024 }
  0x17   :  { %p802_p8 = scmp.ne.s32.totalorder %s1128_s5, %s801_s29  ;;  %p805_p9 = scmp.lt.u32.totalorder %s801_s29, %s1128_s5 }
  0x19   :  { %p807_p10 = pnand %p805_p9, %p802_p8 }
  0x1b   :  { %810 = shalt.err (!%p807_p10)
}
  0x1c   :  { %s811_s1 = scalar_lea.vmem %s64_s24, 1024  ;;  %p816_p12 = scmp.lt.s32.totalorder %s64_s24, %s64_s24 }
  0x1d   :  { %p812_p11 = scmp.ne.s32.totalorder %s64_s24, %s811_s1  ;;  %p817_p13 = scmp.lt.s32.totalorder %s811_s1, %s811_s1 }
  0x1f   :  { %p818_p0 = por %p817_p13, %p816_p12 }
  0x21   :  { %p819_p1 = pnand %p818_p0, %p812_p11 }
  0x23   :  { %822 = shalt.err (!%p819_p1)
}
  0x24   :  { %69 = dma.hbm_to_vmem [thread:$0]  %s1128_s5, 1024, %s64_s24, [#allocation9], %s920_s19, %s920_s19, %s921_s20  }
  0x25   :  { %s823_s17 = scalar_lea.hbm %s1123_s0, 256 }
  0x26   :  { %p824_p2 = scmp.ne.s32.totalorder %s1123_s0, %s823_s17  ;;  %p827_p3 = scmp.lt.u32.totalorder %s823_s17, %s1123_s0 }
  0x28   :  { %p829_p4 = pnand %p827_p3, %p824_p2 }
  0x2a   :  { %832 = shalt.err (!%p829_p4)
}
  0x2b   :  { %s833_s25 = scalar_lea.vmem %s24_s26, 256  ;;  %p838_p6 = scmp.lt.s32.totalorder %s24_s26, %s24_s26 }
  0x2c   :  { %p834_p5 = scmp.ne.s32.totalorder %s24_s26, %s833_s25  ;;  %p839_p7 = scmp.lt.s32.totalorder %s833_s25, %s833_s25 }
  0x2e   :  { %p840_p8 = por %p839_p7, %p838_p6 }
  0x30   :  { %p841_p9 = pnand %p840_p8, %p834_p5 }
  0x32   :  { %844 = shalt.err (!%p841_p9)
}
  0x33   :  { %s924_s5 = smov 128   ;;  %s925_s24 = smov 8  }
  0x34   :  { %29 = dma.hbm_to_vmem [thread:$0]  %s1123_s0, 256, %s24_s26, [#allocation3], %s924_s5, %s924_s5, %s925_s24  }
  0x35   :  { %s926_s29 = smov [#allocation7]   ;;  %s927_s11 = smov [#allocation10]  }
  0x36   :  { %s49_s30 = sshll.u32 %s926_s29, 4  ;;  %s77_s12 = sshll.u32 %s927_s11, 4  ;;  %s50_s30 = int_to_ptr.vmem [resolvable:$true] %s49_s30  ;;  %s78_s12 = int_to_ptr.vmem [resolvable:$true] %s77_s12 }
  0x37   :  { %s845_s10 = scalar_lea.hbm %s1126_s3, 1024 }
  0x38   :  { %p846_p10 = scmp.ne.s32.totalorder %s1126_s3, %s845_s10  ;;  %p849_p11 = scmp.lt.u32.totalorder %s845_s10, %s1126_s3 }
  0x3a   :  { %p851_p12 = pnand %p849_p11, %p846_p10 }
  0x3c   :  { %854 = shalt.err (!%p851_p12)
}
  0x3d   :  { %s855_s0 = scalar_lea.vmem %s50_s30, 1024  ;;  %p860_p0 = scmp.lt.s32.totalorder %s50_s30, %s50_s30 }
  0x3e   :  { %p856_p13 = scmp.ne.s32.totalorder %s50_s30, %s855_s0  ;;  %p861_p1 = scmp.lt.s32.totalorder %s855_s0, %s855_s0 }
  0x40   :  { %p862_p2 = por %p861_p1, %p860_p0 }
  0x42   :  { %p863_p3 = pnand %p862_p2, %p856_p13 }
  0x44   :  { %866 = shalt.err (!%p863_p3)
}
  0x45   :  { %55 = dma.hbm_to_vmem [thread:$0]  %s1126_s3, 1024, %s50_s30, [#allocation6], %s920_s19, %s920_s19, %s921_s20  }
  0x46   :  { %s867_s23 = scalar_lea.hbm %s1130_s7, 1024 }
  0x47   :  { %p868_p4 = scmp.ne.s32.totalorder %s1130_s7, %s867_s23  ;;  %p871_p5 = scmp.lt.u32.totalorder %s867_s23, %s1130_s7 }
  0x49   :  { %p873_p6 = pnand %p871_p5, %p868_p4 }
  0x4b   :  { %876 = shalt.err (!%p873_p6)
}
  0x4c   :  { %s877_s11 = scalar_lea.vmem %s78_s12, 1024  ;;  %p882_p8 = scmp.lt.s32.totalorder %s78_s12, %s78_s12 }
  0x4d   :  { %p878_p7 = scmp.ne.s32.totalorder %s78_s12, %s877_s11  ;;  %p883_p9 = scmp.lt.s32.totalorder %s877_s11, %s877_s11 }
  0x4f   :  { %p884_p10 = por %p883_p9, %p882_p8 }
  0x51   :  { %p885_p11 = pnand %p884_p10, %p878_p7 }
  0x53   :  { %888 = shalt.err (!%p885_p11)
}
  0x54   :  { %83 = dma.hbm_to_vmem [thread:$0]  %s1130_s7, 1024, %s78_s12, [#allocation9], %s920_s19, %s920_s19, %s921_s20  }
  0x55   :  { %911 = dma.done.wait [#allocation3], 256  }
  0x56   :  { %912 = vsyncadd [#allocation3], 4294967040 }
  0x57   :  { %913 = dma.done.wait [#allocation6], 2048  }
  0x58   :  { %914 = vsyncadd [#allocation6], 4294965248 }
  0x59   :  { %915 = dma.done.wait [#allocation9], 2048  }
  0x5a   :  { %916 = vsyncadd [#allocation9], 4294965248  ;;  %v928_v0 = vmov 0.0   ;;  %vm929_vm0 = vmmov 0   ;;  %v747_v1 = vld [vmem:[#allocation5] sm:$0xff]   ;;  %v748_v2 = vld [vmem:[#allocation5 + $0x8] sm:$0xff]  }
  0x5b   :  { %655 = vmatprep.subr.bf16.mxu0 %v928_v0  ;;  %671 = vmatprep.mubr.msk.bf16.mxu0 %vm929_vm0, %v928_v0  ;;  %v749_v3 = vld [vmem:[#allocation5 + $0x10] sm:$0xff]   ;;  %v755_v4 = vld [vmem:[#allocation7] sm:$0xff]   ;;  %v750_v5 = vld [vmem:[#allocation5 + $0x18] sm:$0xff]   ;;  %s930_s10 = smov [#allocation11]  }
  0x5c   :  { %675 = vmatprep.subr.bf16.mxu1 %v928_v0  ;;  %691 = vmatprep.mubr.msk.bf16.mxu1 %vm929_vm0, %v928_v0  ;;  %v756_v6 = vld [vmem:[#allocation7 + $0x8] sm:$0xff]   ;;  %v751_v7 = vld [vmem:[#allocation5 + $0x20] sm:$0xff]   ;;  %v757_v8 = vld [vmem:[#allocation7 + $0x10] sm:$0xff]   ;;  %s569_s14 = sshll.u32 %s930_s10, 4  ;;  %s570_s14 = int_to_ptr.vmem [resolvable:$true] %s569_s14 }
  0x5d   :  { %656 = vmatpush3.bf16.msra.mxu0 %v747_v1  ;;  %676 = vmatpush3.bf16.msra.mxu1 %v755_v4  ;;  %v752_v9 = vld [vmem:[#allocation5 + $0x28] sm:$0xff]   ;;  %v758_v10 = vld [vmem:[#allocation7 + $0x18] sm:$0xff]   ;;  %v753_v11 = vld [vmem:[#allocation5 + $0x30] sm:$0xff]   ;;  %p894_p13 = scmp.lt.s32.totalorder %s570_s14, %s570_s14 }
  0x5e   :  { %657 = vmatprep.subr.bf16.mxu0 %v928_v0  ;;  %677 = vmatprep.subr.bf16.mxu1 %v928_v0  ;;  %v759_v12 = vld [vmem:[#allocation7 + $0x20] sm:$0xff]   ;;  %v754_v13 = vld [vmem:[#allocation5 + $0x38] sm:$0xff]   ;;  %v102_v14 = vld [vmem:[#allocation2] sm:$0xff] }
  0x5f   :  { %v103_v15 = vld [vmem:[#allocation2 + $0x8] sm:$0xff]  ;;  %v760_v16 = vld [vmem:[#allocation7 + $0x28] sm:$0xff]   ;;  %v761_v18 = vld [vmem:[#allocation7 + $0x30] sm:$0xff]  }
  0x60   :  { %v121_v17 = vpack.c.bf16 %v103_v15, %v102_v14  ;;  %v762_v19 = vld [vmem:[#allocation7 + $0x38] sm:$0xff]   ;;  %v763_v20 = vld [vmem:[#allocation8] sm:$0xff]   ;;  %v764_v21 = vld [vmem:[#allocation8 + $0x8] sm:$0xff]  }
  0x61   :  { %658 = vmatpush3.bf16.msra.mxu0 %v748_v2  ;;  %678 = vmatpush3.bf16.msra.mxu1 %v756_v6  ;;  %v765_v22 = vld [vmem:[#allocation8 + $0x10] sm:$0xff]   ;;  %v766_v23 = vld [vmem:[#allocation8 + $0x18] sm:$0xff]   ;;  %v767_v24 = vld [vmem:[#allocation8 + $0x20] sm:$0xff]  }
  0x62   :  { %659 = vmatprep.subr.bf16.mxu0 %v928_v0  ;;  %679 = vmatprep.subr.bf16.mxu1 %v928_v0  ;;  %v768_v25 = vld [vmem:[#allocation8 + $0x28] sm:$0xff]   ;;  %v583_v26 = vld [vmem:[%s1125_s2] ss:$0 sm:$0xff]  ;;  %v770_v37 = vld [vmem:[#allocation8 + $0x38] sm:$0xff]  }
  0x63   :  { %v769_v36 = vld [vmem:[#allocation8 + $0x30] sm:$0xff]   ;;  %v771_v38 = vld [vmem:[#allocation10] sm:$0xff]   ;;  %v772_v39 = vld [vmem:[#allocation10 + $0x8] sm:$0xff]  }
  0x64   :  { %v773_v40 = vld [vmem:[#allocation10 + $0x10] sm:$0xff]   ;;  %v774_v41 = vld [vmem:[#allocation10 + $0x18] sm:$0xff]   ;;  %v775_v42 = vld [vmem:[#allocation10 + $0x20] sm:$0xff]  }
  0x65   :  { %660 = vmatpush3.bf16.msra.mxu0 %v749_v3  ;;  %680 = vmatpush3.bf16.msra.mxu1 %v757_v8  ;;  %v776_v43 = vld [vmem:[#allocation10 + $0x28] sm:$0xff]   ;;  %v592_v44 = vld [vmem:[%s1127_s4] ss:$0 sm:$0xff]  ;;  %v778_v55 = vld [vmem:[#allocation10 + $0x38] sm:$0xff]  }
  0x66   :  { %661 = vmatprep.subr.bf16.mxu0 %v928_v0  ;;  %681 = vmatprep.subr.bf16.mxu1 %v928_v0  ;;  %v777_v54 = vld [vmem:[#allocation10 + $0x30] sm:$0xff]  }
  0x67   :  { %v601_v56 = vld [vmem:[%s1129_s6] ss:$0 sm:$0xff]  ;;  %s889_s6 = scalar_lea.vmem %s570_s14, 256 }
  0x68   :  { %p890_p12 = scmp.ne.s32.totalorder %s570_s14, %s889_s6  ;;  %p895_p0 = scmp.lt.s32.totalorder %s889_s6, %s889_s6 }
  0x69   :  { %662 = vmatpush3.bf16.msra.mxu0 %v750_v5  ;;  %682 = vmatpush3.bf16.msra.mxu1 %v758_v10 }
  0x6a   :  { %663 = vmatprep.subr.bf16.mxu0 %v928_v0  ;;  %683 = vmatprep.subr.bf16.mxu1 %v928_v0  ;;  %p896_p1 = por %p895_p0, %p894_p13 }
  0x6c   :  { %p897_p2 = pnand %p896_p1, %p890_p12 }
  0x6d   :  { %664 = vmatpush3.bf16.msra.mxu0 %v751_v7  ;;  %684 = vmatpush3.bf16.msra.mxu1 %v759_v12 }
  0x6e   :  { %665 = vmatprep.subr.bf16.mxu0 %v928_v0  ;;  %685 = vmatprep.subr.bf16.mxu1 %v928_v0 }
  0x71   :  { %666 = vmatpush3.bf16.msra.mxu0 %v752_v9  ;;  %686 = vmatpush3.bf16.msra.mxu1 %v760_v16 }
  0x72   :  { %667 = vmatprep.subr.bf16.mxu0 %v928_v0  ;;  %687 = vmatprep.subr.bf16.mxu1 %v928_v0 }
  0x75   :  { %668 = vmatpush3.bf16.msra.mxu0 %v753_v11  ;;  %688 = vmatpush3.bf16.msra.mxu1 %v761_v18 }
  0x76   :  { %669 = vmatprep.subr.bf16.mxu0 %v928_v0  ;;  %689 = vmatprep.subr.bf16.mxu1 %v928_v0 }
  0x79   :  { %670 = vmatpush3.bf16.msra.mxu0 %v754_v13  ;;  %690 = vmatpush3.bf16.msra.mxu1 %v762_v19 }
  0x7a   :  { %695 = vmatprep.subr.bf16.mxu0 %v928_v0  ;;  %715 = vmatprep.subr.bf16.mxu1 %v928_v0 }
  0x7c   :  { %672 = vmatmul.mubr.bf16.vlgmr.msra.gmra.mrb[0].mxu0 %v121_v17 }
  0x7d   :  { %711 = vmatprep.mubr.msk.bf16.mxu0 %vm929_vm0, %v928_v0  ;;  %696 = vmatpush3.bf16.msra.mxu0 %v763_v20 }
  0x7e   :  { %697 = vmatprep.subr.bf16.mxu0 %v928_v0 }
  0x81   :  { %698 = vmatpush3.bf16.msra.mxu0 %v764_v21 }
  0x82   :  { %699 = vmatprep.subr.bf16.mxu0 %v928_v0 }
  0x85   :  { %700 = vmatpush3.bf16.msra.mxu0 %v765_v22 }
  0x86   :  { %701 = vmatprep.subr.bf16.mxu0 %v928_v0 }
  0x89   :  { %702 = vmatpush3.bf16.msra.mxu0 %v766_v23 }
  0x8a   :  { %703 = vmatprep.subr.bf16.mxu0 %v928_v0 }
  0x8d   :  { %704 = vmatpush3.bf16.msra.mxu0 %v767_v24 }
  0x8e   :  { %705 = vmatprep.subr.bf16.mxu0 %v928_v0 }
  0x91   :  { %706 = vmatpush3.bf16.msra.mxu0 %v768_v25 }
  0x92   :  { %707 = vmatprep.subr.bf16.mxu0 %v928_v0 }
  0x95   :  { %708 = vmatpush3.bf16.msra.mxu0 %v769_v36 }
  0x96   :  { %709 = vmatprep.subr.bf16.mxu0 %v928_v0 }
  0x99   :  { %710 = vmatpush3.bf16.msra.mxu0 %v770_v37 }
 0x14f   :  { %v210_v27 = vpop.f32.mrb[0].mxu0 }
 0x150   :  { %v211_v28 = vadd.f32 %v583_v26, %v210_v27  ;;  %v673_v29 = vpop.f32.mrb[1].mxu0 }
 0x151   :  { %v213_v30 = vpop.f32.mrb[2].mxu0 }
 0x152   :  { %v214_v31 = vadd.f32 %v583_v26, %v213_v30  ;;  %v674_v32 = vpop.f32.mrb[3].mxu0  ;;  %v217_v33 = vmax.f32 %v211_v28, 0.0 }
 0x154   :  { %v218_v34 = vmax.f32 %v214_v31, 0.0 }
 0x156   :  { %v236_v35 = vpack.c.bf16 %v218_v34, %v217_v33 }
 0x158   :  { %692 = vmatmul.mubr.bf16.vlgmr.msra.gmra.mrb[0].mxu1 %v236_v35 }
 0x159   :  { %731 = vmatprep.mubr.msk.bf16.mxu1 %vm929_vm0, %v928_v0  ;;  %716 = vmatpush3.bf16.msra.mxu1 %v771_v38 }
 0x15a   :  { %717 = vmatprep.subr.bf16.mxu1 %v928_v0 }
 0x15d   :  { %718 = vmatpush3.bf16.msra.mxu1 %v772_v39 }
 0x15e   :  { %719 = vmatprep.subr.bf16.mxu1 %v928_v0 }
 0x161   :  { %720 = vmatpush3.bf16.msra.mxu1 %v773_v40 }
 0x162   :  { %721 = vmatprep.subr.bf16.mxu1 %v928_v0 }
 0x165   :  { %722 = vmatpush3.bf16.msra.mxu1 %v774_v41 }
 0x166   :  { %723 = vmatprep.subr.bf16.mxu1 %v928_v0 }
 0x169   :  { %724 = vmatpush3.bf16.msra.mxu1 %v775_v42 }
 0x16a   :  { %725 = vmatprep.subr.bf16.mxu1 %v928_v0 }
 0x16d   :  { %726 = vmatpush3.bf16.msra.mxu1 %v776_v43 }
 0x16e   :  { %727 = vmatprep.subr.bf16.mxu1 %v928_v0 }
 0x171   :  { %728 = vmatpush3.bf16.msra.mxu1 %v777_v54 }
 0x172   :  { %729 = vmatprep.subr.bf16.mxu1 %v928_v0  ;;  %v610_v0 = vld [vmem:[%s1131_s8] ss:$0 sm:$0xff] }
 0x175   :  { %730 = vmatpush3.bf16.msra.mxu1 %v778_v55 }
 0x22b   :  { %v325_v45 = vpop.f32.mrb[0].mxu1 }
 0x22c   :  { %v326_v46 = vadd.f32 %v592_v44, %v325_v45  ;;  %v693_v47 = vpop.f32.mrb[1].mxu1 }
 0x22d   :  { %v328_v48 = vpop.f32.mrb[2].mxu1 }
 0x22e   :  { %v329_v49 = vadd.f32 %v592_v44, %v328_v48  ;;  %v694_v50 = vpop.f32.mrb[3].mxu1  ;;  %v332_v51 = vmax.f32 %v326_v46, 0.0 }
 0x230   :  { %v333_v52 = vmax.f32 %v329_v49, 0.0 }
 0x232   :  { %v351_v53 = vpack.c.bf16 %v333_v52, %v332_v51 }
 0x234   :  { %712 = vmatmul.mubr.bf16.vlgmr.msra.gmra.mrb[4].mxu0 %v351_v53 }
 0x307   :  { %v440_v57 = vpop.f32.mrb[4].mxu0 }
 0x308   :  { %v441_v58 = vadd.f32 %v601_v56, %v440_v57  ;;  %v713_v59 = vpop.f32.mrb[5].mxu0 }
 0x309   :  { %v443_v60 = vpop.f32.mrb[6].mxu0 }
 0x30a   :  { %v444_v61 = vadd.f32 %v601_v56, %v443_v60  ;;  %v714_v62 = vpop.f32.mrb[7].mxu0  ;;  %v447_v63 = vmax.f32 %v441_v58, 0.0 }
 0x30c   :  { %v448_v1 = vmax.f32 %v444_v61, 0.0 }
 0x30e   :  { %v466_v2 = vpack.c.bf16 %v448_v1, %v447_v63 }
 0x310   :  { %732 = vmatmul.mubr.bf16.vlgmr.msra.gmra.mrb[4].mxu1 %v466_v2 }
 0x3e3   :  { %v555_v3 = vpop.f32.mrb[4].mxu1 }
 0x3e4   :  { %v556_v4 = vadd.f32 %v610_v0, %v555_v3  ;;  %v733_v5 = vpop.f32.mrb[5].mxu1 }
 0x3e5   :  { %v558_v6 = vpop.f32.mrb[6].mxu1 }
 0x3e6   :  { %562 = vst [vmem:[#allocation11] sm:$0xff] %v556_v4  ;;  %v559_v7 = vadd.f32 %v610_v0, %v558_v6  ;;  %v734_v8 = vpop.f32.mrb[7].mxu1 }
 0x3e8   :  { %563 = vst [vmem:[#allocation11 + $0x8] sm:$0xff] %v559_v7 }
 0x3e9   :  { %900 = shalt.err (!%p897_p2)
}
 0x3ea   :  { %s901_s16 = scalar_lea.hbm %s1132_s9, 256 }
 0x3eb   :  { %p902_p3 = scmp.ne.s32.totalorder %s1132_s9, %s901_s16  ;;  %p905_p4 = scmp.lt.u32.totalorder %s901_s16, %s1132_s9 }
 0x3ed   :  { %p907_p5 = pnand %p905_p4, %p902_p3 }
 0x3ef   :  { %910 = shalt.err (!%p907_p5)
}
 0x3f0   :  { %575 = dma.vmem_to_hbm [thread:$0]  %s570_s14, 256, %s1132_s9, [#allocation4], %s924_s5, %s924_s5, %s925_s24  }
 0x3f1   :  { %917 = dma.done.wait [#allocation4], 256  }
 0x3f2   :  { %918 = vsyncadd [#allocation4], 4294967040 }
 0x3f3   :  { %579 = vsyncpa [#allocation3], 1 }
 0x3f4   :  { %580 = vsyncpa [#allocation6], 1 }
 0x3f5   :  { %581 = vsyncpa [#allocation9], 1 }
 0x3f6   :  { %582 = vsyncpa [#allocation4], 1 }

</bundles_post_ra>
